<compile_context>
chip_gen: v7x
topology: tpu7x:2x2x1
jax: 0.10.0
libtpu: 0.0.40
codegen_flags: <defaults>
</compile_context>

<pallas_src>
import functools

import jax
import jax.numpy as jnp
from jax.experimental import pallas as pl
from jax.experimental.pallas import tpu as pltpu


def _round_up(x, m):
    return (x + m - 1) // m * m


def _choose_tm(hw_pad, tm_max):
    """Largest multiple of 128 that divides hw_pad and is <= tm_max."""
    q = hw_pad // 128
    best = 1
    for d in range(1, min(q, max(tm_max // 128, 1)) + 1):
        if q % d == 0:
            best = d
    return 128 * best


# ----------------------------- Pallas kernel --------------------------------
def _adder_kernel(p_ref, w_ref, add_ref, o_ref, *, tc, w_resident):
    """p_ref:   (R_pad, TM)        patches, reduction axis R on sublanes, M on lanes.
       w_ref:   (n_ct, R_pad, tc)  resident weight slab (or (1, R_pad, tc) streamed).
       add_ref: (tc, TM)           f32 padding-correction + bias addend.
       o_ref:   (1, tc, TM)        output tile, lane-dense along M.

       o[0, c, m] = add[c, m] - sum_r |p[r, m] - w[r, c]|   (unmasked sum; the OOB
       padding correction is inside `add`, zero-padded R rows contribute |0-0| = 0)."""
    jc = pl.program_id(2) if w_resident else 0
    p = p_ref[...].astype(jnp.float32)          # load + upcast once (hoisted)
    w = w_ref[jc].astype(jnp.float32)           # (R_pad, tc) weight tile

    for c0 in range(0, tc, 8):                  # store in full 8-sublane chunks
        rows = []
        for co in range(c0, c0 + 8):            # static unroll over chunk channels
            rows.append(jnp.sum(jnp.abs(p - w[:, co:co + 1]),
                                axis=0, keepdims=True))        # (1, TM)
        s = jnp.concatenate(rows, axis=0)                       # (8, TM)
        o_ref[0, c0:c0 + 8, :] = (add_ref[c0:c0 + 8, :] - s).astype(o_ref.dtype)


# ------------------------------- JAX glue ------------------------------------
def _im2col(x, K, stride, padding, Hout, Wout):
    """x: (N, C, H, W) -> patches (C*K*K, N, Hout*Wout).

    Reduction-axis order is (ci, kh, kw) (matches w.reshape(Cout, C*K*K)).
    Out-of-bounds positions read the zero padding."""
    N, C, H, W = x.shape
    xp = jnp.pad(x, ((0, 0), (0, 0), (padding, padding), (padding, padding)))
    cols = []
    for kh in range(K):
        for kw in range(K):
            cols.append(xp[:, :, kh:kh + stride * Hout:stride,
                               kw:kw + stride * Wout:stride])
    p = jnp.stack(cols, axis=2)                    # (N, C, K*K, Hout, Wout)
    p = jnp.transpose(p, (1, 2, 0, 3, 4))          # (C, K*K, N, Hout, Wout)
    return p.reshape(C * K * K, N, Hout * Wout)    # (R, N, HW)


def _padding_correction(w, H, W, stride, padding, Hout, Wout):
    """corr[c, ho, wo] = sum over OOB (kh, kw) at (ho, wo) of sum_ci |w[c, ci, kh, kw]|.

    The kernel's unmasked sum counted |0 - w| for those positions; adding this
    correction restores the skip-OOB semantics of the CUDA kernel."""
    Cout, Cin, K, _ = w.shape
    hin = jnp.arange(Hout)[:, None] * stride - padding + jnp.arange(K)[None, :]
    win = jnp.arange(Wout)[:, None] * stride - padding + jnp.arange(K)[None, :]
    h_inv = (hin < 0) | (hin >= H)
    w_inv = (win < 0) | (win >= W)
    inv = (h_inv[:, None, :, None] | w_inv[None, :, None, :]).astype(jnp.float32)
    w_abs = jnp.abs(w.astype(jnp.float32)).sum(axis=1)           # (Cout, K, K)
    return jnp.einsum('xyhw,chw->cxy', inv, w_abs)               # (Cout, Hout, Wout)


def _adder2d_group(x, w, bias, stride, padding, Hout, Wout, *, tm_max=1024):
    N, Cin, H, W = x.shape
    Cout, Cin_w, K, _ = w.shape
    assert Cin == Cin_w

    R = Cin * K * K
    HW = Hout * Wout
    R_pad = _round_up(R, 8)              # sublane pad only (36 -> 40, not 128)
    HW_pad = _round_up(HW, 128)          # per-image lane pad only (no junk tiles)

    tc = min(16, _round_up(Cout, 8))     # channel tile (multiple of 8)
    C_pad = _round_up(Cout, tc)
    n_ct = C_pad // tc

    itx = jnp.dtype(x.dtype).itemsize
    itw = jnp.dtype(w.dtype).itemsize

    # Weight residency + VMEM budget (account for the 128-lane padding of tc-wide tiles).
    w_res_bytes = 2 * n_ct * R_pad * _round_up(tc, 128) * itw
    w_resident = w_res_bytes <= 8 * 1024 * 1024

    def vmem_need(tm):
        wbytes = w_res_bytes if w_resident else 2 * R_pad * _round_up(tc, 128) * itw
        return (2 * R_pad * tm * itx       # patches (double-buffered)
                + wbytes                   # weights
                + 2 * tc * tm * 4          # f32 corr/bias addend
                + 2 * tc * tm * itx)       # output tile

    budget = 36 * 1024 * 1024              # headroom inside v7x's 64 MiB physical VMEM
    tm = _choose_tm(HW_pad, tm_max)
    while vmem_need(tm) > budget and tm > 128:
        tm = _choose_tm(HW_pad, tm // 2)
    n_hw = HW_pad // tm
    vmem_limit = int(min(max(vmem_need(tm) + (8 << 20), 32 << 20), 40 << 20))

    # --- operands ----------------------------------------------------------------
    patches = _im2col(x, K, stride, padding, Hout, Wout)          # (R, N, HW)
    patches = jnp.pad(patches, ((0, R_pad - R), (0, 0), (0, HW_pad - HW)))
    patches = patches.reshape(R_pad, N * HW_pad)                  # (R_pad, M_pad)

    w_flat = w.reshape(Cout, R)
    w_pad = jnp.pad(w_flat, ((0, C_pad - Cout), (0, R_pad - R)))
    # (n_ct, R_pad, tc): w_tiles[t, r, c] = w_pad[t*tc + c, r]
    w_tiles = jnp.transpose(w_pad.reshape(n_ct, tc, R_pad), (0, 2, 1))

    # Padding correction + bias, added in the kernel epilogue (f32, before downcast).
    add = jnp.zeros((Cout, HW), jnp.float32)
    if padding > 0:
        add = add + _padding_correction(w, H, W, stride, padding,
                                        Hout, Wout).reshape(Cout, HW)
    if bias is not None:
        add = add + bias.astype(jnp.float32)[:, None]
    add = jnp.pad(add, ((0, C_pad - Cout), (0, HW_pad - HW)))     # (C_pad, HW_pad)

    if w_resident:
        w_spec = pl.BlockSpec((n_ct, R_pad, tc), lambda n, t, j: (0, 0, 0))
    else:  # too big to keep resident: stream one (R_pad, tc) block per channel tile
        w_spec = pl.BlockSpec((1, R_pad, tc), lambda n, t, j: (j, 0, 0))

    out = pl.pallas_call(
        functools.partial(_adder_kernel, tc=tc, w_resident=w_resident),
        out_shape=jax.ShapeDtypeStruct((N, C_pad, HW_pad), x.dtype),
        grid_spec=pltpu.PrefetchScalarGridSpec(
            num_scalar_prefetch=0,
            grid=(N, n_hw, n_ct),
            in_specs=[
                pl.BlockSpec((R_pad, tm), lambda n, t, j: (0, n * n_hw + t)),  # patches
                w_spec,                                                        # weights
                pl.BlockSpec((tc, tm), lambda n, t, j: (j, t)),                # addend
            ],
            out_specs=pl.BlockSpec((1, tc, tm), lambda n, t, j: (n, j, t)),
        ),
        compiler_params=pltpu.CompilerParams(
            dimension_semantics=("parallel", "parallel", "arbitrary"),
            vmem_limit_bytes=vmem_limit),
    )(patches, w_tiles, add)

    # For aligned shapes (C_pad == Cout, HW_pad == HW) this is a free view.
    return out[:, :Cout, :HW].reshape(N, Cout, Hout, Wout)


@functools.partial(jax.jit, static_argnames=("stride", "padding", "groups"))
def adder2d_forward(x, weight, bias=None, *, stride=1, padding=0, groups=1):
    """x: (N, Cin, H, W); weight: (Cout, Cin//groups, K, K); bias: (Cout,) or None."""
    N, Cin, H, W = x.shape
    Cout, Cin_g, K, _ = weight.shape
    assert Cin_g == Cin // groups and Cout % groups == 0
    Hout = (H - K + 2 * padding) // stride + 1
    Wout = (W - K + 2 * padding) // stride + 1

    cout_g = Cout // groups
    outs = []
    for g in range(groups):  # TODO(synk): fold groups into a grid axis for groups > 1
        xg = x[:, g * Cin_g:(g + 1) * Cin_g]
        wg = weight[g * cout_g:(g + 1) * cout_g]
        bg = None if bias is None else bias[g * cout_g:(g + 1) * cout_g]
        outs.append(_adder2d_group(xg, wg, bg, stride, padding, Hout, Wout))
    return jnp.concatenate(outs, axis=1) if groups > 1 else outs[0]


def _reference(x, weight, bias, stride, padding, groups):
    """Pure-JAX reference with identical (skip-OOB) semantics, for validation.
    Uses an explicit validity mask (independent of the kernel's correction-term path)."""
    N, Cin, H, W = x.shape
    Cout, Cin_g, K, _ = weight.shape
    Hout = (H - K + 2 * padding) // stride + 1
    Wout = (W - K + 2 * padding) // stride + 1
    cout_g = Cout // groups
    outs = []
    for g in range(groups):
        xg = x[:, g * Cin_g:(g + 1) * Cin_g]
        wg = weight[g * cout_g:(g + 1) * cout_g].reshape(cout_g, -1)
        p = _im2col(xg, K, stride, padding, Hout, Wout).reshape(Cin_g * K * K, -1)
        m = _im2col(jnp.ones_like(xg), K, stride, padding,
                    Hout, Wout).reshape(Cin_g * K * K, -1)
        o = -(jnp.abs(p[None] - wg[:, :, None]) * m[None]).sum(1)     # (cout_g, M)
        o = o.reshape(cout_g, N, Hout, Wout).transpose(1, 0, 2, 3)
        outs.append(o)
    out = jnp.concatenate(outs, axis=1) if groups > 1 else outs[0]
    if bias is not None:
        out = out + bias[None, :, None, None]
    return out


if __name__ == "__main__":
    # Module config: Adder2D(input_channel=4, output_channel=8, kernel_size=3,
    #                        stride=1, padding=1, groups=1, bias=False)
    N, Cin, H, W = 2, 4, 16, 16
    Cout, K, stride, padding, groups = 8, 3, 1, 1, 1

    key = jax.random.PRNGKey(0)
    kx, kw = jax.random.split(key)
    x = jax.random.normal(kx, (N, Cin, H, W), dtype=jnp.float32)
    # self.adder = Parameter(nn.init.normal_(torch.randn(...)))  -> standard normal
    weight = jax.random.normal(kw, (Cout, Cin // groups, K, K), dtype=jnp.float32)
    bias = None  # bias=False in module default

    out = adder2d_forward(x, weight, bias, stride=stride, padding=padding, groups=groups)
    out = jax.block_until_ready(out)

    ref = _reference(x, weight, bias, stride, padding, groups)
    Hout = (H - K + 2 * padding) // stride + 1
    Wout = (W - K + 2 * padding) // stride + 1
    assert out.shape == (N, Cout, Hout, Wout)
    assert jnp.allclose(out, ref, atol=1e-4, rtol=1e-4), float(jnp.max(jnp.abs(out - ref)))

    print("KERNEL_OK")
</pallas_src>

<mosaic_0001>
module attributes {stable_mosaic.version = 11 : i64} {
  func.func @_adder_kernel(%arg0: i32, %arg1: i32, %arg2: i32, %arg3: memref<40x256xf32, #tpu.memory_space<vmem>>, %arg4: memref<1x40x8xf32, #tpu.memory_space<vmem>>, %arg5: memref<8x256xf32, #tpu.memory_space<vmem>>, %arg6: memref<1x8x256xf32, #tpu.memory_space<vmem>>) attributes {dimension_semantics = [#tpu.dimension_semantics<parallel>, #tpu.dimension_semantics<parallel>, #tpu.dimension_semantics<arbitrary>], iteration_bounds = array<i64: 2, 1, 1>, scalar_prefetch = 0 : i64, scratch_operands = 0 : i64, tpu.core_type = #tpu.core_type<tc>, window_params = [{transform_indices = @transform_0, window_bounds = array<i64: 40, 256>}, {pipeline_mode = #tpu.pipeline_mode<synchronous>, transform_indices = @transform_1, window_bounds = array<i64: 1, 40, 8>}, {transform_indices = @transform_2, window_bounds = array<i64: 8, 256>}, {transform_indices = @transform_3, window_bounds = array<i64: 1, 8, 256>}]} {
    %c0 = arith.constant 0 : index
    %c0_0 = arith.constant 0 : index
    %0 = vector.load %arg3[%c0, %c0_0] : memref<40x256xf32, #tpu.memory_space<vmem>>, vector<40x256xf32>
    %1 = arith.index_cast %arg2 : i32 to index
    %c0_1 = arith.constant 0 : index
    %c0_2 = arith.constant 0 : index
    %2 = vector.load %arg4[%1, %c0_1, %c0_2] : memref<1x40x8xf32, #tpu.memory_space<vmem>>, vector<1x40x8xf32>
    %3 = vector.shape_cast %2 : vector<1x40x8xf32> to vector<40x8xf32>
    %4 = vector.extract_strided_slice %3 {offsets = [0, 0], sizes = [40, 1], strides = [1, 1]} : vector<40x8xf32> to vector<40x1xf32>
    %5 = vector.broadcast %4 : vector<40x1xf32> to vector<40x256xf32>
    %6 = arith.subf %0, %5 : vector<40x256xf32>
    %7 = math.absf %6 : vector<40x256xf32>
    %cst = arith.constant dense<0.000000e+00> : vector<256xf32>
    %8 = vector.multi_reduction <add>, %7, %cst [0] : vector<40x256xf32> to vector<256xf32>
    %9 = vector.shape_cast %8 : vector<256xf32> to vector<1x256xf32>
    %10 = vector.extract_strided_slice %3 {offsets = [0, 1], sizes = [40, 1], strides = [1, 1]} : vector<40x8xf32> to vector<40x1xf32>
    %11 = vector.broadcast %10 : vector<40x1xf32> to vector<40x256xf32>
    %12 = arith.subf %0, %11 : vector<40x256xf32>
    %13 = math.absf %12 : vector<40x256xf32>
    %cst_3 = arith.constant dense<0.000000e+00> : vector<256xf32>
    %14 = vector.multi_reduction <add>, %13, %cst_3 [0] : vector<40x256xf32> to vector<256xf32>
    %15 = vector.shape_cast %14 : vector<256xf32> to vector<1x256xf32>
    %16 = vector.extract_strided_slice %3 {offsets = [0, 2], sizes = [40, 1], strides = [1, 1]} : vector<40x8xf32> to vector<40x1xf32>
    %17 = vector.broadcast %16 : vector<40x1xf32> to vector<40x256xf32>
    %18 = arith.subf %0, %17 : vector<40x256xf32>
    %19 = math.absf %18 : vector<40x256xf32>
    %cst_4 = arith.constant dense<0.000000e+00> : vector<256xf32>
    %20 = vector.multi_reduction <add>, %19, %cst_4 [0] : vector<40x256xf32> to vector<256xf32>
    %21 = vector.shape_cast %20 : vector<256xf32> to vector<1x256xf32>
    %22 = vector.extract_strided_slice %3 {offsets = [0, 3], sizes = [40, 1], strides = [1, 1]} : vector<40x8xf32> to vector<40x1xf32>
    %23 = vector.broadcast %22 : vector<40x1xf32> to vector<40x256xf32>
    %24 = arith.subf %0, %23 : vector<40x256xf32>
    %25 = math.absf %24 : vector<40x256xf32>
    %cst_5 = arith.constant dense<0.000000e+00> : vector<256xf32>
    %26 = vector.multi_reduction <add>, %25, %cst_5 [0] : vector<40x256xf32> to vector<256xf32>
    %27 = vector.shape_cast %26 : vector<256xf32> to vector<1x256xf32>
    %28 = vector.extract_strided_slice %3 {offsets = [0, 4], sizes = [40, 1], strides = [1, 1]} : vector<40x8xf32> to vector<40x1xf32>
    %29 = vector.broadcast %28 : vector<40x1xf32> to vector<40x256xf32>
    %30 = arith.subf %0, %29 : vector<40x256xf32>
    %31 = math.absf %30 : vector<40x256xf32>
    %cst_6 = arith.constant dense<0.000000e+00> : vector<256xf32>
    %32 = vector.multi_reduction <add>, %31, %cst_6 [0] : vector<40x256xf32> to vector<256xf32>
    %33 = vector.shape_cast %32 : vector<256xf32> to vector<1x256xf32>
    %34 = vector.extract_strided_slice %3 {offsets = [0, 5], sizes = [40, 1], strides = [1, 1]} : vector<40x8xf32> to vector<40x1xf32>
    %35 = vector.broadcast %34 : vector<40x1xf32> to vector<40x256xf32>
    %36 = arith.subf %0, %35 : vector<40x256xf32>
    %37 = math.absf %36 : vector<40x256xf32>
    %cst_7 = arith.constant dense<0.000000e+00> : vector<256xf32>
    %38 = vector.multi_reduction <add>, %37, %cst_7 [0] : vector<40x256xf32> to vector<256xf32>
    %39 = vector.shape_cast %38 : vector<256xf32> to vector<1x256xf32>
    %40 = vector.extract_strided_slice %3 {offsets = [0, 6], sizes = [40, 1], strides = [1, 1]} : vector<40x8xf32> to vector<40x1xf32>
    %41 = vector.broadcast %40 : vector<40x1xf32> to vector<40x256xf32>
    %42 = arith.subf %0, %41 : vector<40x256xf32>
    %43 = math.absf %42 : vector<40x256xf32>
    %cst_8 = arith.constant dense<0.000000e+00> : vector<256xf32>
    %44 = vector.multi_reduction <add>, %43, %cst_8 [0] : vector<40x256xf32> to vector<256xf32>
    %45 = vector.shape_cast %44 : vector<256xf32> to vector<1x256xf32>
    %46 = vector.extract_strided_slice %3 {offsets = [0, 7], sizes = [40, 1], strides = [1, 1]} : vector<40x8xf32> to vector<40x1xf32>
    %47 = vector.broadcast %46 : vector<40x1xf32> to vector<40x256xf32>
    %48 = arith.subf %0, %47 : vector<40x256xf32>
    %49 = math.absf %48 : vector<40x256xf32>
    %cst_9 = arith.constant dense<0.000000e+00> : vector<256xf32>
    %50 = vector.multi_reduction <add>, %49, %cst_9 [0] : vector<40x256xf32> to vector<256xf32>
    %51 = vector.shape_cast %50 : vector<256xf32> to vector<1x256xf32>
    %52 = tpu.concatenate %9, %15, %21, %27, %33, %39, %45, %51 in 0 : vector<1x256xf32>, vector<1x256xf32>, vector<1x256xf32>, vector<1x256xf32>, vector<1x256xf32>, vector<1x256xf32>, vector<1x256xf32>, vector<1x256xf32> -> vector<8x256xf32>
    %c0_10 = arith.constant 0 : index
    %c0_11 = arith.constant 0 : index
    %53 = vector.load %arg5[%c0_10, %c0_11] : memref<8x256xf32, #tpu.memory_space<vmem>>, vector<8x256xf32>
    %54 = arith.subf %53, %52 : vector<8x256xf32>
    %c0_12 = arith.constant 0 : index
    %c0_13 = arith.constant 0 : index
    %c0_14 = arith.constant 0 : index
    %55 = vector.load %arg6[%c0_12, %c0_13, %c0_14] : memref<1x8x256xf32, #tpu.memory_space<vmem>>, vector<1x8x256xf32>
    %56 = vector.shape_cast %55 : vector<1x8x256xf32> to vector<8x256xf32>
    %57 = vector.shape_cast %54 : vector<8x256xf32> to vector<1x8x256xf32>
    tpu.vector_store %arg6[%c0_12, %c0_13, %c0_14], %57 {strides = array<i32>} : memref<1x8x256xf32, #tpu.memory_space<vmem>>, vector<1x8x256xf32>,
    return
  }
  func.func @transform_0(%arg0: i32, %arg1: i32, %arg2: i32) -> (i32, i32) {
    %c1_i32 = arith.constant 1 : i32
    %0 = arith.muli %arg0, %c1_i32 : i32
    %1 = arith.addi %0, %arg1 : i32
    %c0_i32 = arith.constant 0 : i32
    %c0_i32_0 = arith.constant 0 : i32
    return %c0_i32, %1 : i32, i32
  }
  func.func @transform_1(%arg0: i32, %arg1: i32, %arg2: i32) -> (i32, i32, i32) {
    %c0_i32 = arith.constant 0 : i32
    %c0_i32_0 = arith.constant 0 : i32
    %c0_i32_1 = arith.constant 0 : i32
    %c0_i32_2 = arith.constant 0 : i32
    return %c0_i32, %c0_i32_0, %c0_i32_1 : i32, i32, i32
  }
  func.func @transform_2(%arg0: i32, %arg1: i32, %arg2: i32) -> (i32, i32) {
    %c0_i32 = arith.constant 0 : i32
    return %arg2, %arg1 : i32, i32
  }
  func.func @transform_3(%arg0: i32, %arg1: i32, %arg2: i32) -> (i32, i32, i32) {
    %c0_i32 = arith.constant 0 : i32
    return %arg0, %arg2, %arg1 : i32, i32, i32
  }
}

</mosaic_0001>

<bundles_post_ra>
// kernel: adder2d_forward.1
= control target key start
LH: loop header
LB: loop body
LE: loop exit
PB: predicated region body
PF: predicated region fallthrough
CT: control target
= control target key end

     0   :  { %s1106_s12 = smov 0   ;;  %s1108_s13 = smov 0   ;;  %s1397_s0 = inlined_call_operand.vmem [shape: f32[40,512], index: 0, kind: input, shape index: {}]   ;;  %s1398_s1 = inlined_call_operand.vmem [shape: f32[1,40,8], index: 1, kind: input, shape index: {}]   ;;  %s1399_s2 = inlined_call_operand.vmem [shape: f32[8,256], index: 2, kind: input, shape index: {}]   ;;  %s1400_s3 = inlined_call_operand.vmem [shape: f32[2,8,256], index: 3, kind: output, shape index: {}]  }
   0x1   :  { %s1110_s14 = smov 0   ;;  %s1112_s15 = smov 0  }
   0x2   :  { %s1114_s16 = smov 0  }
   0x3 LB: > { %s32_s17 = sadd.s32 1, %s1072_s15  ;;  %p48_p1 = scmp.ne.s32.totalorder %s1064_s13, %s1060_s12  ;;  %s1076_s16 = sphi %s1114_s16, %s13_s16   ;;  %s1072_s15 = sphi %s1112_s15, %s1404_s15   ;;  %s1068_s14 = sphi %s1110_s14, %s1403_s14   ;;  %s1064_s13 = sphi %s1108_s13, %s1402_s13   ;;  %s1060_s12 = sphi %s1106_s12, %s1401_s12  }
   0x4   : > { %p34_p0 = scmp.ge.s32.totalorder %s32_s17, 2  ;;  %p49_p2 = scmp.eq.s32.totalorder %s1076_s16, 0 }
   0x5   : > { %s41_s19 = sadd.s32 1, %s1064_s13  ;;  %p953_p5 = scmp.ge.s32.totalorder %s1076_s16, 2 }
   0x6   : > { %s1406_s17 = smov (%p34_p0, %s32_s17), 0  ;;  %p50_p3 = por %p49_p2, %p48_p1 }
   0x7   : > { %s38_s18 = ssub.s32 %s1072_s15, %s1406_s17  ;;  %169 = sbr.rel (%p953_p5) target bundleno = 23 (0x17), region = 24 }
   0x8   : > { %p39_p4 = scmp.eq.s32.totalorder %s38_s18, 0 }
   0xa   : > { %s1141_s20 = scalar_select %p39_p4, %s1064_s13, %s41_s19  }
   0xe   : > { %172 = sbr.rel (!%p50_p3) target bundleno = 23 (0x17), region = 28  ;;  %s174_s21 = sand.u32 (%p50_p3), 1, %s1064_s13  }
   0xf   : > { %s961_s22 = sshll.u32 (%p50_p3), %s1072_s15, 4  ;;  %s963_s23 = smul.u32 (%p50_p3), 80, %s174_s21 }
  0x10   : > { %s180_s26 = scalar_lea.vmem (%p50_p3), %s1397_s0, %s961_s22 }
  0x11   : > { %v193_v0 = vld [vmem:[%s180_s26] sm:$0xff] (%p50_p3)  ;;  %v195_v1 = vld [vmem:[%s180_s26 + $0x8] sm:$0xff] (%p50_p3)  ;;  %s176_s27 = scalar_lea.vmem (%p50_p3), [#allocation2], %s963_s23 }
  0x12   : > { %v197_v2 = vld [vmem:[%s180_s26 + $0x20] sm:$0xff] (%p50_p3)  ;;  %v199_v3 = vld [vmem:[%s180_s26 + $0x28] sm:$0xff] (%p50_p3)  ;;  %194 = vst [vmem:[%s176_s27] sm:$0xff] (%p50_p3), %v193_v0  ;;  %196 = vst [vmem:[%s176_s27 + $0x8] sm:$0xff] (%p50_p3), %v195_v1 }
  0x13   : > { %v201_v4 = vld [vmem:[%s180_s26 + $0x40] sm:$0xff] (%p50_p3)  ;;  %v203_v5 = vld [vmem:[%s180_s26 + $0x48] sm:$0xff] (%p50_p3)  ;;  %198 = vst [vmem:[%s176_s27 + $0x10] sm:$0xff] (%p50_p3), %v197_v2  ;;  %200 = vst [vmem:[%s176_s27 + $0x18] sm:$0xff] (%p50_p3), %v199_v3 }
  0x14   : > { %202 = vst [vmem:[%s176_s27 + $0x20] sm:$0xff] (%p50_p3), %v201_v4  ;;  %204 = vst [vmem:[%s176_s27 + $0x28] sm:$0xff] (%p50_p3), %v203_v5  ;;  %v205_v6 = vld [vmem:[%s180_s26 + $0x60] sm:$0xff] (%p50_p3)  ;;  %v207_v7 = vld [vmem:[%s180_s26 + $0x68] sm:$0xff] (%p50_p3) }
  0x15   : > { %v209_v8 = vld [vmem:[%s180_s26 + $0x80] sm:$0xff]  ;;  %206 = vst [vmem:[%s176_s27 + $0x30] sm:$0xff] %v205_v6  ;;  %208 = vst [vmem:[%s176_s27 + $0x38] sm:$0xff] %v207_v7  ;;  %v211_v9 = vld [vmem:[%s180_s26 + $0x88] sm:$0xff] }
  0x16   : > { %210 = vst [vmem:[%s176_s27 + $0x40] sm:$0xff] %v209_v8  ;;  %212 = vst [vmem:[%s176_s27 + $0x48] sm:$0xff] %v211_v9 }
  0x17 PF: > { %p956_p6 = scmp.ge.s32.totalorder %s1076_s16, 1  ;;  %p217_p7 = scmp.lt.s32.totalorder %s1076_s16, 3 }
  0x19   : > { %p218_p8 = pnand %p956_p6, %p217_p7 }
  0x1a   : > { %v304_v10 = vld [vmem:[%s1398_s1 + $0x10] sm:$0xff] (!%p218_p8)  ;;  %v302_v11 = vld [vmem:[%s1398_s1] sm:$0xff] (!%p218_p8)  ;;  %v1078_v12 = vmov (!%p218_p8), 0   ;;  %v1160_v13 = vld [vmem:[%s1398_s1 + $0x18] sm:$0xff] (!%p218_p8)  ;;  %v1079_v16 = vmov (!%p218_p8), 1   ;;  %v1080_v17 = vmov (!%p218_p8), 2  }
  0x1b   : > { %221 = sbr.rel (%p218_p8) target bundleno = 288 (0x120), region = 51  ;;  %1014 = vset.pattern.permute.xlu1 (!%p218_p8), %v1078_v12  ;;  %1013 = vset.pattern.permute.xlu0 (!%p218_p8), %v1078_v12  ;;  %v303_v14 = vld [vmem:[%s1398_s1 + $0x8] sm:$0xff] (!%p218_p8)  ;;  %v1169_v15 = vld [vmem:[%s1398_s1 + $0x20] sm:$0xff] (!%p218_p8)  ;;  %v1081_v18 = vmov (!%p218_p8), 3   ;;  %v1082_v19 = vmov (!%p218_p8), 4   ;;  %v1083_v20 = vmov (!%p218_p8), 6  }
  0x1c   : > { %319 = vperm.xlu1 (!%p218_p8), %1014, %v304_v10   ;;  %309 = vperm.xlu0 (!%p218_p8), %1013, %v302_v11   ;;  %v1084_v21 = vmov (!%p218_p8), 5   ;;  %v1085_v22 = vmov (!%p218_p8), 7   ;;  %s224_s11 = sand.u32 (!%p218_p8), 1, %s1060_s12   ;;  %vm792_vm0 = vcmask (!%p218_p8), 1040384   ;;  %vm795_vm1 = vcmask (!%p218_p8), 1041408   ;;  %p277_p9 = scmp.lt.s32.totalorder (!%p218_p8), %s1068_s14, 1 }
  0x1d   : > { %s964_s18 = smul.u32 (!%p218_p8), 80, %s224_s11  ;;  %vm798_vm2 = vcmask (!%p218_p8), 1042432   ;;  %vm801_vm3 = vcmask (!%p218_p8), 1043456   ;;  %vm804_vm4 = vcmask (!%p218_p8), 1044480   ;;  %vm807_vm5 = vcmask (!%p218_p8), 1045504  }
  0x1e   : > { %vm810_vm6 = vcmask (!%p218_p8), 1046528  }
  0x1f   : > { %s226_s19 = scalar_lea.vmem (!%p218_p8), [#allocation2], %s964_s18 }
  0x20   : > { %324 = vperm.xlu1 (!%p218_p8), %1014, %v1160_v13   ;;  %314 = vperm.xlu0 (!%p218_p8), %1013, %v303_v14   ;;  %v1187_v23 = vld [vmem:[%s226_s19] sm:$0xff] (!%p218_p8)  ;;  %v1189_v24 = vld [vmem:[%s226_s19 + $0x8] sm:$0xff] (!%p218_p8)  ;;  %v1195_v30 = vld [vmem:[%s226_s19 + $0x10] sm:$0xff] (!%p218_p8) }
  0x21   : > { %v1192_v28 = vld [vmem:[%s226_s19 + $0x20] sm:$0xff] (!%p218_p8)  ;;  %v1197_v31 = vld [vmem:[%s226_s19 + $0x18] sm:$0xff] (!%p218_p8)  ;;  %v1199_v32 = vld [vmem:[%s226_s19 + $0x28] sm:$0xff] (!%p218_p8) }
  0x22   : > { %v1201_v34 = vld [vmem:[%s226_s19 + $0x30] sm:$0xff]  ;;  %v1203_v35 = vld [vmem:[%s226_s19 + $0x38] sm:$0xff]  ;;  %v1209_v43 = vld [vmem:[%s226_s19 + $0x40] sm:$0xff]  ;;  %s1408_s14 = smov (!%p277_p9, %s1068_s14), 1 }
  0x23   : > { %v1211_v44 = vld [vmem:[%s226_s19 + $0x48] sm:$0xff]  ;;  %s962_s12 = sshll.u32 %s1408_s14, 4 }
  0x24   : > { %1015 = vset.pattern.permute.xlu1 %v1079_v16  ;;  %329 = vperm.xlu0 %1013, %v1169_v15   ;;  %s288_s26 = scalar_lea.vmem %s1400_s3, %s962_s12 }
  0x25   : > { %373 = vperm.xlu1 %1015, %v302_v11  }
  0x28   : > { %1016 = vset.pattern.permute.xlu0 %v1079_v16 }
  0x29   : > { %381 = vperm.xlu1 %1015, %v304_v10   ;;  %377 = vperm.xlu0 %1016, %v303_v14  }
  0x2d   : > { %385 = vperm.xlu1 %1015, %v1160_v13   ;;  %389 = vperm.xlu0 %1016, %v1169_v15  }
  0x31   : > { %1017 = vset.pattern.permute.xlu1 %v1080_v17  ;;  %1018 = vset.pattern.permute.xlu0 %v1080_v17 }
  0x32   : > { %433 = vperm.xlu1 %1017, %v302_v11   ;;  %437 = vperm.xlu0 %1018, %v303_v14  }
  0x36   : > { %441 = vperm.xlu1 %1017, %v304_v10   ;;  %449 = vperm.xlu0 %1018, %v1169_v15  }
  0x3a   : > { %445 = vperm.xlu1 %1017, %v1160_v13   ;;  %1020 = vset.pattern.permute.xlu0 %v1081_v18 }
  0x3b   : > { %497 = vperm.xlu0 %1020, %v303_v14  }
  0x3e   : > { %1019 = vset.pattern.permute.xlu1 %v1081_v18 }
  0x3f   : > { %493 = vperm.xlu1 %1019, %v302_v11   ;;  %501 = vperm.xlu0 %1020, %v304_v10  }
  0x43   : > { %1021 = vset.pattern.permute.xlu1 %v1082_v19  ;;  %1025 = vset.pattern.permute.xlu0 %v1083_v20 }
  0x44   : > { %553 = vperm.xlu1 %1021, %v302_v11   ;;  %677 = vperm.xlu0 %1025, %v303_v14  }
  0x48   : > { %557 = vperm.xlu1 %1021, %v303_v14   ;;  %681 = vperm.xlu0 %1025, %v304_v10  }
  0x4c   : > { %1022 = vset.pattern.permute.xlu1 %v1084_v21  ;;  %1030 = vset.pattern.permute.xlu0 %v1084_v21 }
  0x4d   : > { %613 = vperm.xlu1 %1022, %v302_v11   ;;  %617 = vperm.xlu0 %1030, %v303_v14  }
  0x51   : > { %1023 = vset.pattern.permute.xlu1 %v1082_v19  ;;  %629 = vperm.xlu0 %1030, %v1169_v15  }
  0x52   : > { %561 = vperm.xlu1 %1023, %v304_v10  }
  0x55   : > { %1035 = vset.pattern.permute.xlu0 %v1085_v22 }
  0x56   : > { %1024 = vset.pattern.permute.xlu1 %v1083_v20  ;;  %733 = vperm.xlu0 %1035, %v302_v11  }
  0x57   : > { %673 = vperm.xlu1 %1024, %v302_v11  }
  0x5a   : > { %741 = vperm.xlu0 %1035, %v304_v10  }
  0x5b   : > { %1026 = vset.pattern.permute.xlu1 %v1081_v18 }
  0x5c   : > { %505 = vperm.xlu1 %1026, %v1160_v13  }
  0x5e   : > { %749 = vperm.xlu0 %1035, %v1169_v15  }
  0x60   : > { %1027 = vset.pattern.permute.xlu1 %v1084_v21 }
  0x61   : > { %621 = vperm.xlu1 %1027, %v304_v10  }
  0x65   : > { %1028 = vset.pattern.permute.xlu1 %v1085_v22 }
  0x66   : > { %737 = vperm.xlu1 %1028, %v303_v14  }
  0x6a   : > { %1029 = vset.pattern.permute.xlu1 %v1082_v19 }
  0x6b   : > { %565 = vperm.xlu1 %1029, %v1160_v13  }
  0x6f   : > { %1031 = vset.pattern.permute.xlu1 %v1081_v18 }
  0x70   : > { %509 = vperm.xlu1 %1031, %v1169_v15  }
  0x74   : > { %1032 = vset.pattern.permute.xlu1 %v1084_v21 }
  0x75   : > { %625 = vperm.xlu1 %1032, %v1160_v13  }
  0x79   : > { %1033 = vset.pattern.permute.xlu1 %v1082_v19 }
  0x7a   : > { %569 = vperm.xlu1 %1033, %v1169_v15  }
  0x7e   : > { %1034 = vset.pattern.permute.xlu1 %v1083_v20 }
  0x7f   : > { %685 = vperm.xlu1 %1034, %v1160_v13  }
  0x83   : > { %1036 = vset.pattern.permute.xlu1 %v1085_v22 }
  0x84   : > { %745 = vperm.xlu1 %1036, %v1160_v13  }
  0x88   : > { %1037 = vset.pattern.permute.xlu1 %v1083_v20 }
  0x89   : > { %689 = vperm.xlu1 %1037, %v1169_v15  }
  0x9b   : > { %v320_v25 = vpop.permute.xlu1 %319  ;;  %v310_v26 = vpop.permute.xlu0 %309 }
  0x9c   : > { %v332_v27 = vsub.f32 %v1187_v23, %v310_v26  ;;  %v333_v29 = vsub.f32 %v1189_v24, %v310_v26  ;;  %v336_v37 = vsub.f32 %v1192_v28, %v320_v25  ;;  %v337_v41 = vsub.f32 %v1199_v32, %v320_v25 }
  0x9e   : > { %v342_v38 = vand.u32 2147483647, %v332_v27  ;;  %v343_v42 = vand.u32 2147483647, %v333_v29  ;;  %v346_v50 = vand.u32 2147483647, %v336_v37 }
  0x9f   : > { %v325_v33 = vpop.permute.xlu1 %324  ;;  %v315_v36 = vpop.permute.xlu0 %314  ;;  %v347_v55 = vand.u32 2147483647, %v337_v41 }
  0xa0   : > { %v334_v39 = vsub.f32 %v1195_v30, %v315_v36  ;;  %v335_v40 = vsub.f32 %v1197_v31, %v315_v36  ;;  %v338_v45 = vsub.f32 %v1201_v34, %v325_v33  ;;  %v339_v46 = vsub.f32 %v1203_v35, %v325_v33 }
  0xa2   : > { %v344_v47 = vand.u32 2147483647, %v334_v39  ;;  %v345_v48 = vand.u32 2147483647, %v335_v40  ;;  %v348_v57 = vand.u32 2147483647, %v338_v45 }
  0xa3   : > { %v330_v49 = vpop.permute.xlu0 %329  ;;  %v349_v58 = vand.u32 2147483647, %v339_v46 }
  0xa4   : > { %v352_v51 = vadd.f32 %v344_v47, %v342_v38  ;;  %v374_v52 = vpop.permute.xlu1 %373  ;;  %v340_v53 = vsub.f32 %v1209_v43, %v330_v49  ;;  %v341_v54 = vsub.f32 %v1211_v44, %v330_v49  ;;  %v362_v56 = vadd.f32 %v345_v48, %v343_v42 }
  0xa5   : > { %v392_v62 = vsub.f32 %v1187_v23, %v374_v52  ;;  %v393_v63 = vsub.f32 %v1189_v24, %v374_v52 }
  0xa6   : > { %v353_v59 = vadd.f32 %v352_v51, %v346_v50  ;;  %v350_v60 = vand.u32 2147483647, %v340_v53  ;;  %v363_v61 = vadd.f32 %v362_v56, %v347_v55  ;;  %v351_v0 = vand.u32 2147483647, %v341_v54 }
  0xa7   : > { %v402_v10 = vand.u32 2147483647, %v392_v62  ;;  %v403_v11 = vand.u32 2147483647, %v393_v63 }
  0xa8   : > { %v354_v1 = vadd.f32 %v353_v59, %v348_v57  ;;  %v382_v2 = vpop.permute.xlu1 %381  ;;  %v378_v3 = vpop.permute.xlu0 %377  ;;  %v364_v4 = vadd.f32 %v363_v61, %v349_v58 }
  0xa9   : > { %v396_v5 = vsub.f32 %v1192_v28, %v382_v2  ;;  %v394_v6 = vsub.f32 %v1195_v30, %v378_v3  ;;  %v397_v8 = vsub.f32 %v1199_v32, %v382_v2  ;;  %v395_v9 = vsub.f32 %v1197_v31, %v378_v3 }
  0xaa   : > { %v355_v7 = vadd.f32 %v354_v1, %v350_v60  ;;  %v365_v12 = vadd.f32 %v364_v4, %v351_v0 }
  0xab   : > { %v404_v13 = vand.u32 2147483647, %v394_v6  ;;  %v406_v15 = vand.u32 2147483647, %v396_v5  ;;  %v405_v16 = vand.u32 2147483647, %v395_v9 }
  0xac   : > { %v356_v14 = vrot.slane %v355_v7, 4  ;;  %v386_v17 = vpop.permute.xlu1 %385  ;;  %v390_v18 = vpop.permute.xlu0 %389  ;;  %v366_v19 = vrot.slane %v365_v12, 4  ;;  %v407_v25 = vand.u32 2147483647, %v397_v8 }
  0xad   : > { %v412_v20 = vadd.f32 %v404_v13, %v402_v10  ;;  %v398_v21 = vsub.f32 %v1201_v34, %v386_v17  ;;  %v399_v22 = vsub.f32 %v1203_v35, %v386_v17  ;;  %v422_v26 = vadd.f32 %v405_v16, %v403_v11 }
  0xae   : > { %v400_v27 = vsub.f32 %v1209_v43, %v390_v18  ;;  %v401_v29 = vsub.f32 %v1211_v44, %v390_v18  ;;  %v357_v33 = vadd.f32 %v356_v14, %v355_v7  ;;  %v367_v39 = vadd.f32 %v366_v19, %v365_v12 }
  0xaf   : > { %v408_v36 = vand.u32 2147483647, %v398_v21  ;;  %v409_v37 = vand.u32 2147483647, %v399_v22  ;;  %v413_v38 = vadd.f32 %v412_v20, %v406_v15  ;;  %v423_v40 = vadd.f32 %v422_v26, %v407_v25 }
  0xb0   : > { %v410_v41 = vand.u32 2147483647, %v400_v27  ;;  %v411_v42 = vand.u32 2147483647, %v401_v29  ;;  %v358_v48 = vrot.slane %v357_v33, 2  ;;  %v368_v50 = vrot.slane %v367_v39, 2 }
  0xb1   : > { %v414_v45 = vadd.f32 %v413_v38, %v408_v36  ;;  %v434_v46 = vpop.permute.xlu1 %433  ;;  %v424_v47 = vadd.f32 %v423_v40, %v409_v37  ;;  %v438_v11 = vpop.permute.xlu0 %437 }
  0xb2   : > { %v359_v55 = vadd.f32 %v358_v48, %v357_v33  ;;  %v369_v57 = vadd.f32 %v368_v50, %v367_v39  ;;  %v452_v17 = vsub.f32 %v1187_v23, %v434_v46  ;;  %v454_v18 = vsub.f32 %v1195_v30, %v438_v11 }
  0xb3   : > { %v415_v49 = vadd.f32 %v414_v45, %v410_v41  ;;  %v425_v51 = vadd.f32 %v424_v47, %v411_v42  ;;  %v453_v19 = vsub.f32 %v1189_v24, %v434_v46  ;;  %v455_v20 = vsub.f32 %v1197_v31, %v438_v11 }
  0xb4   : > { %v360_v62 = vrot.slane %v359_v55, 1  ;;  %v370_v0 = vrot.slane %v369_v57, 1  ;;  %v462_v27 = vand.u32 2147483647, %v452_v17  ;;  %v464_v29 = vand.u32 2147483647, %v454_v18 }
  0xb5   : > { %v416_v52 = vrot.slane %v415_v49, 4  ;;  %v442_v53 = vpop.permute.xlu1 %441  ;;  %v426_v54 = vrot.slane %v425_v51, 4  ;;  %v450_v13 = vpop.permute.xlu0 %449  ;;  %v463_v36 = vand.u32 2147483647, %v453_v19  ;;  %v465_v37 = vand.u32 2147483647, %v455_v20 }
  0xb6   : > { %v361_v5 = vadd.f32 %v360_v62, %v359_v55  ;;  %v371_v7 = vadd.f32 %v370_v0, %v369_v57  ;;  %v456_v22 = vsub.f32 %v1192_v28, %v442_v53  ;;  %v457_v26 = vsub.f32 %v1199_v32, %v442_v53 }
  0xb7   : > { %v417_v56 = vadd.f32 %v416_v52, %v415_v49  ;;  %v427_v58 = vadd.f32 %v426_v54, %v425_v51  ;;  %v472_v42 = vadd.f32 %v464_v29, %v462_v27  ;;  %v460_v45 = vsub.f32 %v1209_v43, %v450_v13 }
  0xb8   : > { %v466_v39 = vand.u32 2147483647, %v456_v22  ;;  %v467_v41 = vand.u32 2147483647, %v457_v26  ;;  %v482_v48 = vadd.f32 %v465_v37, %v463_v36  ;;  %v461_v49 = vsub.f32 %v1211_v44, %v450_v13 }
  0xb9   : > { %v418_v59 = vrot.slane %v417_v56, 2  ;;  %v446_v60 = vpop.permute.xlu1 %445  ;;  %v428_v61 = vrot.slane %v427_v58, 2  ;;  %v470_v54 = vand.u32 2147483647, %v460_v45 }
  0xba   : > { %v498_v15 = vpop.permute.xlu0 %497  ;;  %v458_v33 = vsub.f32 %v1201_v34, %v446_v60  ;;  %v459_v38 = vsub.f32 %v1203_v35, %v446_v60  ;;  %v473_v51 = vadd.f32 %v472_v42, %v466_v39  ;;  %v483_v52 = vadd.f32 %v482_v48, %v467_v41 }
  0xbb   : > { %v419_v63 = vadd.f32 %v418_v59, %v417_v56  ;;  %v429_v1 = vadd.f32 %v428_v61, %v427_v58  ;;  %v471_v56 = vand.u32 2147483647, %v461_v49  ;;  %v514_v59 = vsub.f32 %v1195_v30, %v498_v15 }
  0xbc   : > { %v468_v46 = vand.u32 2147483647, %v458_v33  ;;  %v469_v50 = vand.u32 2147483647, %v459_v38  ;;  %v515_v62 = vsub.f32 %v1197_v31, %v498_v15 }
  0xbd   : > { %v420_v2 = vrot.slane %v419_v63, 1  ;;  %v430_v3 = vrot.slane %v429_v1, 1 }
  0xbe   : > { %v494_v4 = vpop.permute.xlu1 %493  ;;  %v502_v25 = vpop.permute.xlu0 %501  ;;  %v474_v55 = vadd.f32 %v473_v51, %v468_v46  ;;  %v484_v57 = vadd.f32 %v483_v52, %v469_v50 }
  0xbf   : > { %v421_v6 = vadd.f32 %v420_v2, %v419_v63  ;;  %v431_v8 = vadd.f32 %v430_v3, %v429_v1  ;;  %v512_v60 = vsub.f32 %v1187_v23, %v494_v4  ;;  %v513_v63 = vsub.f32 %v1189_v24, %v494_v4 }
  0xc0   : > { %v475_v61 = vadd.f32 %v474_v55, %v470_v54  ;;  %v485_v1 = vadd.f32 %v484_v57, %v471_v56  ;;  %v516_v2 = vsub.f32 %v1192_v28, %v502_v25  ;;  %v517_v3 = vsub.f32 %v1199_v32, %v502_v25 }
  0xc1   : > { %v1227_v9 = vsel %vm792_vm0, %v361_v5, %v421_v6  ;;  %v1229_v10 = vsel %vm792_vm0, %v371_v7, %v431_v8  ;;  %v524_v5 = vand.u32 2147483647, %v514_v59  ;;  %v522_v6 = vand.u32 2147483647, %v512_v60 }
  0xc2   : > { %v476_v7 = vrot.slane %v475_v61, 4  ;;  %v525_v8 = vand.u32 2147483647, %v515_v62  ;;  %v523_v11 = vand.u32 2147483647, %v513_v63  ;;  %v486_v17 = vrot.slane %v485_v1, 4 }
  0xc3   : > { %v1231_v12 = vpop.permute.xlu1 %553  ;;  %v678_v47 = vpop.permute.xlu0 %677  ;;  %v526_v19 = vand.u32 2147483647, %v516_v2  ;;  %v527_v20 = vand.u32 2147483647, %v517_v3  ;;  %v532_v26 = vadd.f32 %v524_v5, %v522_v6 }
  0xc4   : > { %v572_v18 = vsub.f32 %v1187_v23, %v1231_v12  ;;  %v573_v4 = vsub.f32 %v1189_v24, %v1231_v12  ;;  %v694_v22 = vsub.f32 %v1195_v30, %v678_v47  ;;  %v1275_v36 = vadd.f32 %v476_v7, %v475_v61 }
  0xc5   : > { %v542_v12 = vadd.f32 %v525_v8, %v523_v11  ;;  %v1280_v39 = vadd.f32 %v486_v17, %v485_v1  ;;  %v695_v45 = vsub.f32 %v1197_v31, %v678_v47  ;;  %v533_v52 = vadd.f32 %v532_v26, %v526_v19 }
  0xc6   : > { %v582_v41 = vand.u32 2147483647, %v572_v18  ;;  %v583_v42 = vand.u32 2147483647, %v573_v4  ;;  %v1283_v46 = vand.u32 2147483647, %v694_v22 }
  0xc7   : > { %v1233_v14 = vpop.permute.xlu1 %557  ;;  %v682_v58 = vpop.permute.xlu0 %681  ;;  %v478_v56 = vrot.slane %v1275_v36, 2  ;;  %v543_v57 = vadd.f32 %v542_v12, %v527_v20  ;;  %v488_v47 = vrot.slane %v1280_v39, 2  ;;  %v1289_v61 = vand.u32 2147483647, %v695_v45 }
  0xc8   : > { %v574_v25 = vsub.f32 %v1195_v30, %v1233_v14  ;;  %v575_v27 = vsub.f32 %v1197_v31, %v1233_v14  ;;  %v696_v49 = vsub.f32 %v1192_v28, %v682_v58  ;;  %v697_v50 = vsub.f32 %v1199_v32, %v682_v58 }
  0xca   : > { %v584_v48 = vand.u32 2147483647, %v574_v25  ;;  %v585_v54 = vand.u32 2147483647, %v575_v27  ;;  %v1293_v58 = vand.u32 2147483647, %v696_v49 }
  0xcb   : > { %v1295_v2 = vand.u32 2147483647, %v697_v50 }
  0xcc   : > { %v1235_v16 = vpop.permute.xlu1 %613  ;;  %v618_v13 = vpop.permute.xlu0 %617  ;;  %v592_v1 = vadd.f32 %v584_v48, %v582_v41  ;;  %v602_v5 = vadd.f32 %v585_v54, %v583_v42 }
  0xcd   : > { %v632_v29 = vsub.f32 %v1187_v23, %v1235_v16  ;;  %v634_v33 = vsub.f32 %v1195_v30, %v618_v13  ;;  %v633_v37 = vsub.f32 %v1189_v24, %v1235_v16  ;;  %v635_v38 = vsub.f32 %v1197_v31, %v618_v13 }
  0xcf   : > { %v642_v16 = vand.u32 2147483647, %v632_v29  ;;  %v644_v55 = vand.u32 2147483647, %v634_v33  ;;  %v643_v59 = vand.u32 2147483647, %v633_v37 }
  0xd0   : > { %v630_v14 = vpop.permute.xlu0 %629  ;;  %v645_v60 = vand.u32 2147483647, %v635_v38 }
  0xd1   : > { %v1241_v21 = vpop.permute.xlu1 %561  ;;  %v640_v62 = vsub.f32 %v1209_v43, %v630_v14  ;;  %v641_v63 = vsub.f32 %v1211_v44, %v630_v14  ;;  %v652_v6 = vadd.f32 %v644_v55, %v642_v16 }
  0xd2   : > { %v576_v3 = vsub.f32 %v1192_v28, %v1241_v21  ;;  %v662_v17 = vadd.f32 %v645_v60, %v643_v59  ;;  %v577_v18 = vsub.f32 %v1199_v32, %v1241_v21 }
  0xd3   : > { %v1308_v20 = vand.u32 2147483647, %v640_v62  ;;  %v1310_v22 = vand.u32 2147483647, %v641_v63 }
  0xd4   : > { %v587_v41 = vand.u32 2147483647, %v577_v18 }
  0xd5   : > { %v734_v11 = vpop.permute.xlu0 %733 }
  0xd6   : > { %v1247_v40 = vpop.permute.xlu1 %673  ;;  %v752_v19 = vsub.f32 %v1187_v23, %v734_v11  ;;  %v753_v29 = vsub.f32 %v1189_v24, %v734_v11 }
  0xd7   : > { %v692_v27 = vsub.f32 %v1187_v23, %v1247_v40  ;;  %v693_v42 = vsub.f32 %v1189_v24, %v1247_v40 }
  0xd8   : > { %v762_v14 = vand.u32 2147483647, %v752_v19  ;;  %v763_v59 = vand.u32 2147483647, %v753_v29 }
  0xd9   : > { %v702_v16 = vand.u32 2147483647, %v692_v27  ;;  %v742_v24 = vpop.permute.xlu0 %741 }
  0xdb   : > { %v1251_v53 = vpop.permute.xlu1 %505 }
  0xdc   : > { %v518_v7 = vsub.f32 %v1201_v34, %v1251_v53  ;;  %v519_v8 = vsub.f32 %v1203_v35, %v1251_v53  ;;  %v586_v53 = vand.u32 2147483647, %v576_v3  ;;  %v603_v3 = vadd.f32 %v602_v5, %v587_v41 }
  0xdd   : > { %v756_v5 = vsub.f32 %v1192_v28, %v742_v24 }
  0xde   : > { %v528_v33 = vand.u32 2147483647, %v518_v7  ;;  %v529_v12 = vand.u32 2147483647, %v519_v8  ;;  %v593_v54 = vadd.f32 %v592_v1, %v586_v53  ;;  %v703_v7 = vand.u32 2147483647, %v693_v42 }
  0xe0   : > { %v1257_v0 = vpop.permute.xlu1 %621  ;;  %v534_v60 = vadd.f32 %v533_v52, %v528_v33  ;;  %v544_v62 = vadd.f32 %v543_v57, %v529_v12  ;;  %v712_v33 = vadd.f32 %v1283_v46, %v702_v16  ;;  %v766_v46 = vand.u32 2147483647, %v756_v5 }
  0xe1   : > { %v636_v4 = vsub.f32 %v1192_v28, %v1257_v0  ;;  %v637_v21 = vsub.f32 %v1199_v32, %v1257_v0  ;;  %v1338_v28 = vadd.f32 %v478_v56, %v1275_v36 }
  0xe3   : > { %v646_v45 = vand.u32 2147483647, %v636_v4  ;;  %v647_v55 = vand.u32 2147483647, %v637_v21 }
  0xe5   : > { %v1265_v15 = vpop.permute.xlu1 %737  ;;  %v653_v11 = vadd.f32 %v652_v6, %v646_v45  ;;  %v663_v1 = vadd.f32 %v662_v17, %v647_v55 }
  0xea   : > { %v566_v51 = vpop.permute.xlu1 %565 }
  0xeb   : > { %v578_v37 = vsub.f32 %v1201_v34, %v566_v51  ;;  %v579_v38 = vsub.f32 %v1203_v35, %v566_v51 }
  0xed   : > { %v588_v51 = vand.u32 2147483647, %v578_v37  ;;  %v589_v63 = vand.u32 2147483647, %v579_v38 }
  0xef   : > { %v510_v13 = vpop.permute.xlu1 %509  ;;  %v594_v53 = vadd.f32 %v593_v54, %v588_v51  ;;  %v604_v6 = vadd.f32 %v603_v3, %v589_v63 }
  0xf0   : > { %v520_v25 = vsub.f32 %v1209_v43, %v510_v13  ;;  %v521_v26 = vsub.f32 %v1211_v44, %v510_v13  ;;  %v754_v13 = vsub.f32 %v1195_v30, %v1265_v15 }
  0xf2   : > { %v530_v49 = vand.u32 2147483647, %v520_v25  ;;  %v531_v23 = vand.u32 2147483647, %v521_v26  ;;  %v755_v25 = vsub.f32 %v1197_v31, %v1265_v15  ;;  %v757_v26 = vsub.f32 %v1199_v32, %v742_v24 }
  0xf3   : > { %v764_v17 = vand.u32 2147483647, %v754_v13  ;;  %v722_v31 = vadd.f32 %v1289_v61, %v703_v7  ;;  %v1343_v32 = vadd.f32 %v488_v47, %v1280_v39  ;;  %v713_v39 = vadd.f32 %v712_v33, %v1293_v58 }
  0xf4   : > { %v626_v48 = vpop.permute.xlu1 %625  ;;  %v535_v18 = vadd.f32 %v534_v60, %v530_v49  ;;  %v545_v4 = vadd.f32 %v544_v62, %v531_v23  ;;  %v765_v15 = vand.u32 2147483647, %v755_v25  ;;  %v767_v45 = vand.u32 2147483647, %v757_v26 }
  0xf5   : > { %v638_v50 = vsub.f32 %v1201_v34, %v626_v48  ;;  %v639_v0 = vsub.f32 %v1203_v35, %v626_v48  ;;  %v723_v47 = vadd.f32 %v722_v31, %v1295_v2 }
  0xf6   : > { %v536_v12 = vrot.slane %v535_v18, 4  ;;  %v546_v37 = vrot.slane %v545_v4, 4  ;;  %v782_v56 = vadd.f32 %v765_v15, %v763_v59 }
  0xf7   : > { %v648_v40 = vand.u32 2147483647, %v638_v50  ;;  %v649_v8 = vand.u32 2147483647, %v639_v0  ;;  %v750_v50 = vpop.permute.xlu0 %749  ;;  %v772_v0 = vadd.f32 %v764_v17, %v762_v14 }
  0xf8   : > { %v537_v54 = vadd.f32 %v536_v12, %v535_v18  ;;  %v547_v16 = vadd.f32 %v546_v37, %v545_v4  ;;  %v783_v58 = vadd.f32 %v782_v56, %v767_v45 }
  0xf9   : > { %v570_v19 = vpop.permute.xlu1 %569  ;;  %v654_v27 = vadd.f32 %v653_v11, %v648_v40  ;;  %v664_v21 = vadd.f32 %v663_v1, %v649_v8  ;;  %v773_v59 = vadd.f32 %v772_v0, %v766_v46 }
  0xfa   : > { %v580_v52 = vsub.f32 %v1209_v43, %v570_v19  ;;  %v581_v57 = vsub.f32 %v1211_v44, %v570_v19  ;;  %v538_v24 = vrot.slane %v537_v54, 2  ;;  %v548_v40 = vrot.slane %v547_v16, 2 }
  0xfb   : > { %v655_v48 = vadd.f32 %v654_v27, %v1308_v20  ;;  %v665_v61 = vadd.f32 %v664_v21, %v1310_v22  ;;  %v760_v20 = vsub.f32 %v1209_v43, %v750_v50  ;;  %v761_v22 = vsub.f32 %v1211_v44, %v750_v50 }
  0xfc   : > { %v590_v30 = vand.u32 2147483647, %v580_v52  ;;  %v591_v29 = vand.u32 2147483647, %v581_v57 }
  0xfd   : > { %v656_v63 = vrot.slane %v655_v48, 4  ;;  %v666_v14 = vrot.slane %v665_v61, 4  ;;  %v770_v19 = vand.u32 2147483647, %v760_v20  ;;  %v771_v1 = vand.u32 2147483647, %v761_v22 }
  0xfe   : > { %v595_v38 = vadd.f32 %v594_v53, %v590_v30  ;;  %v605_v41 = vadd.f32 %v604_v6, %v591_v29  ;;  %v686_v42 = vpop.permute.xlu1 %685  ;;  %v549_v53 = vadd.f32 %v548_v40, %v547_v16 }
  0xff   : > { %v698_v36 = vsub.f32 %v1201_v34, %v686_v42  ;;  %v699_v55 = vsub.f32 %v1203_v35, %v686_v42  ;;  %v657_v25 = vadd.f32 %v656_v63, %v655_v48  ;;  %v667_v52 = vadd.f32 %v666_v14, %v665_v61 }
 0x100   : > { %v596_v49 = vrot.slane %v595_v38, 4  ;;  %v606_v23 = vrot.slane %v605_v41, 4  ;;  %v480_v42 = vrot.slane %v1338_v28, 1  ;;  %v550_v48 = vrot.slane %v549_v53, 1 }
 0x101   : > { %v708_v8 = vand.u32 2147483647, %v698_v36  ;;  %v709_v11 = vand.u32 2147483647, %v699_v55  ;;  %v658_v31 = vrot.slane %v657_v25, 2  ;;  %v668_v15 = vrot.slane %v667_v52, 2 }
 0x102   : > { %v597_v60 = vadd.f32 %v596_v49, %v595_v38  ;;  %v607_v62 = vadd.f32 %v606_v23, %v605_v41  ;;  %v551_v22 = vadd.f32 %v550_v48, %v549_v53  ;;  %v814_v53 = vld [vmem:[%s1399_s2 + $0x8] sm:$0xff] }
 0x103   : > { %v746_v51 = vpop.permute.xlu1 %745  ;;  %v714_v27 = vadd.f32 %v713_v39, %v708_v8  ;;  %v724_v21 = vadd.f32 %v723_v47, %v709_v11  ;;  %v659_v16 = vadd.f32 %v658_v31, %v657_v25  ;;  %v669_v36 = vadd.f32 %v668_v15, %v667_v52 }
 0x104   : > { %v758_v3 = vsub.f32 %v1201_v34, %v746_v51  ;;  %v759_v7 = vsub.f32 %v1203_v35, %v746_v51  ;;  %v598_v18 = vrot.slane %v597_v60, 2  ;;  %v608_v4 = vrot.slane %v607_v62, 2 }
 0x105   : > { %v539_v34 = vadd.f32 %v538_v24, %v537_v54  ;;  %v481_v39 = vadd.f32 %v480_v42, %v1338_v28  ;;  %v660_v24 = vrot.slane %v659_v16, 1  ;;  %v670_v40 = vrot.slane %v669_v36, 1 }
 0x106   : > { %v768_v2 = vand.u32 2147483647, %v758_v3  ;;  %v769_v13 = vand.u32 2147483647, %v759_v7  ;;  %v599_v33 = vadd.f32 %v598_v18, %v597_v60  ;;  %v609_v17 = vadd.f32 %v608_v4, %v607_v62 }
 0x107   : > { %v540_v45 = vrot.slane %v539_v34, 1  ;;  %v796_v28 = vsel %vm795_vm1, %v1227_v9, %v481_v39  ;;  %v661_v52 = vadd.f32 %v660_v24, %v659_v16 }
 0x108   : > { %v774_v57 = vadd.f32 %v773_v59, %v768_v2  ;;  %v784_v5 = vadd.f32 %v783_v58, %v769_v13  ;;  %v690_v26 = vpop.permute.xlu1 %689  ;;  %v600_v23 = vrot.slane %v599_v33, 1  ;;  %v610_v50 = vrot.slane %v609_v17, 1 }
 0x109   : > { %v700_v35 = vsub.f32 %v1209_v43, %v690_v26  ;;  %v701_v6 = vsub.f32 %v1211_v44, %v690_v26  ;;  %v490_v43 = vrot.slane %v1343_v32, 1  ;;  %v541_v20 = vadd.f32 %v540_v45, %v539_v34  ;;  %v813_v34 = vld [vmem:[%s1399_s2] sm:$0xff] }
 0x10a   : > { %v775_v30 = vadd.f32 %v774_v57, %v770_v19  ;;  %v785_v29 = vadd.f32 %v784_v5, %v771_v1  ;;  %v601_v14 = vadd.f32 %v600_v23, %v599_v33  ;;  %v611_v3 = vadd.f32 %v610_v50, %v609_v17 }
 0x10b   : > { %v710_v12 = vand.u32 2147483647, %v700_v35  ;;  %v711_v37 = vand.u32 2147483647, %v701_v6  ;;  %v491_v47 = vadd.f32 %v490_v43, %v1343_v32  ;;  %v799_v11 = vsel %vm798_vm2, %v796_v28, %v541_v20 }
 0x10c   : > { %v776_v38 = vrot.slane %v775_v30, 4  ;;  %v786_v41 = vrot.slane %v785_v29, 4  ;;  %v802_v4 = vsel %vm801_vm3, %v799_v11, %v601_v14  ;;  %v671_v57 = vadd.f32 %v670_v40, %v669_v36 }
 0x10d   : > { %v715_v46 = vadd.f32 %v714_v27, %v710_v12  ;;  %v725_v44 = vadd.f32 %v724_v21, %v711_v37  ;;  %v797_v32 = vsel %vm795_vm1, %v1229_v10, %v491_v47  ;;  %v805_v35 = vsel %vm804_vm4, %v802_v4, %v661_v52 }
 0x10e   : > { %v777_v61 = vadd.f32 %v776_v38, %v775_v30  ;;  %v787_v49 = vadd.f32 %v786_v41, %v785_v29  ;;  %v800_v2 = vsel %vm798_vm2, %v797_v32, %v551_v22 }
 0x10f   : > { %v716_v0 = vrot.slane %v715_v46, 4  ;;  %v726_v54 = vrot.slane %v725_v44, 4  ;;  %v803_v19 = vsel %vm801_vm3, %v800_v2, %v611_v3 }
 0x110   : > { %v778_v56 = vrot.slane %v777_v61, 2  ;;  %v788_v55 = vrot.slane %v787_v49, 2  ;;  %v806_v6 = vsel %vm804_vm4, %v803_v19, %v671_v57 }
 0x111   : > { %v717_v60 = vadd.f32 %v716_v0, %v715_v46  ;;  %v727_v62 = vadd.f32 %v726_v54, %v725_v44 }
 0x112   : > { %v779_v51 = vadd.f32 %v778_v56, %v777_v61  ;;  %v789_v63 = vadd.f32 %v788_v55, %v787_v49 }
 0x113   : > { %v718_v7 = vrot.slane %v717_v60, 2  ;;  %v728_v59 = vrot.slane %v727_v62, 2 }
 0x114   : > { %v780_v13 = vrot.slane %v779_v51, 1  ;;  %v790_v18 = vrot.slane %v789_v63, 1 }
 0x115   : > { %v719_v8 = vadd.f32 %v718_v7, %v717_v60  ;;  %v729_v58 = vadd.f32 %v728_v59, %v727_v62 }
 0x116   : > { %v781_v5 = vadd.f32 %v780_v13, %v779_v51  ;;  %v791_v26 = vadd.f32 %v790_v18, %v789_v63 }
 0x117   : > { %v720_v1 = vrot.slane %v719_v8, 1  ;;  %v730_v25 = vrot.slane %v729_v58, 1 }
 0x119   : > { %v721_v9 = vadd.f32 %v720_v1, %v719_v8  ;;  %v731_v10 = vadd.f32 %v730_v25, %v729_v58 }
 0x11b   : > { %v808_v27 = vsel %vm807_vm5, %v805_v35, %v721_v9  ;;  %v809_v21 = vsel %vm807_vm5, %v806_v6, %v731_v10 }
 0x11c   : > { %v811_v30 = vsel %vm810_vm6, %v808_v27, %v781_v5  ;;  %v812_v29 = vsel %vm810_vm6, %v809_v21, %v791_v26 }
 0x11d   : > { %v815_v33 = vsub.f32 %v813_v34, %v811_v30  ;;  %v816_v17 = vsub.f32 %v814_v53, %v812_v29 }
 0x11f   : > { %817 = vst [vmem:[%s288_s26] sm:$0xff] %v815_v33  ;;  %818 = vst [vmem:[%s288_s26 + $0x8] sm:$0xff] %v816_v17 }
 0x120 PF: > { %s13_s16 = sadd.s32 1, %s1076_s16   ;;  %s1401_s12 = smov %s1064_s13 }
 0x121   : > { %p10_p10 = scmp.ge.s32.totalorder %s13_s16, 4   ;;  %s1402_s13 = smov %s1141_s20 }
 0x122   : > { %s1403_s14 = smov %s1072_s15  ;;  %s1404_s15 = smov %s1406_s17 }
 0x123   :  { %12 = sbr.rel (!%p10_p10) target bundleno = 3 (0x3), region = 94 }

</bundles_post_ra>
